<compile_context>
chip_gen: v7x
topology: tpu7x:2x2x1
jax: 0.10.0
libtpu: 0.0.40
codegen_flags: <defaults>
</compile_context>

<pallas_src>
import math

import jax
import jax.numpy as jnp
from jax.experimental import pallas as pl
from jax.experimental.pallas import tpu as pltpu


def _interaction_kernel(v_ref, l_ref,
                        w1cat_ref, b1cat_ref,      # fused [w1_V | w1_L] (V path)
                        w2v_ref, b2v_ref,
                        w1l_ref, b1l_ref,
                        w2l_ref, b2l_ref,
                        a_ref, vnext_ref):
    cd = v_ref.dtype                    # MXU-input dtype (bf16 on the fast path)
    f32 = jnp.float32
    TB, Nv, D = v_ref.shape
    Nl = l_ref.shape[1]
    H = w2v_ref.shape[0]
    K = Nl + Nv
    K_pad = a_ref.shape[-1]

    # Flatten the batch into M for the FFN matmuls (big-M MXU fill).
    Vf = v_ref[...].reshape(TB * Nv, D)
    Lf = l_ref[...].reshape(TB * Nl, D)

    # ---- V path: one fused first-layer matmul over [w1_V | w1_L], then split ----
    h_cat = jnp.dot(Vf, w1cat_ref[...], preferred_element_type=f32) + b1cat_ref[...]
    h_cat = jnp.maximum(h_cat, 0.0).astype(cd)                       # (TB*Nv, 2H)
    fv_v = jnp.dot(h_cat[:, :H], w2v_ref[...], preferred_element_type=f32) + b2v_ref[...]
    fl_v = jnp.dot(h_cat[:, H:], w2l_ref[...], preferred_element_type=f32) + b2l_ref[...]

    # ---- L path: ffn_L(L) ----
    h_l = jnp.dot(Lf, w1l_ref[...], preferred_element_type=f32) + b1l_ref[...]
    h_l = jnp.maximum(h_l, 0.0).astype(cd)
    fl_l = jnp.dot(h_l, w2l_ref[...], preferred_element_type=f32) + b2l_ref[...]

    fv_v = fv_v.reshape(TB, Nv, D)      # ffn_V(V)
    fl_v = fl_v.reshape(TB, Nv, D)      # ffn_L(V)
    fl_l = fl_l.reshape(TB, Nl, D)      # ffn_L(L)

    # ---- Fused bilinear attention: stack keys once, one NT matmul for A ----
    pad = K_pad - K
    if pad > 0:
        zpad = jnp.zeros((TB, pad, D), f32)
        k_all = jnp.concatenate([fl_l, fl_v, zpad], axis=1)          # keys for A
        kv_all = jnp.concatenate([fl_l, fv_v, zpad], axis=1)         # values for V_next
    else:
        k_all = jnp.concatenate([fl_l, fl_v], axis=1)
        kv_all = jnp.concatenate([fl_l, fv_v], axis=1)

    scale = 1.0 / math.sqrt(D)
    a = jnp.einsum("bqd,bkd->bqk", fv_v.astype(cd), k_all.astype(cd),
                   preferred_element_type=f32) * scale               # (TB, Nv, K_pad)
    a_ref[...] = a                                                   # lane-dense store

    # torch softmax(A, dim=1): softmax over the query (Nv) axis, per column.
    # Padded columns are all-zero -> uniform P there, but they only ever hit
    # the zero rows of kv_all, so V_next is exact.
    a_max = jnp.max(a, axis=1, keepdims=True)
    e = jnp.exp(a - a_max)
    denom = jnp.sum(e, axis=1, keepdims=True)
    p = e * pl.reciprocal(denom, approx=(cd != jnp.float32))

    vnext_ref[...] = jnp.einsum("bqk,bkd->bqd", p.astype(cd), kv_all.astype(cd),
                                preferred_element_type=f32)


def _pick_block_b(B):
    # Largest divisor of B (capped at 8) that still leaves >= 2 grid steps when
    # possible, so a parallel grid axis can feed both TensorCores (v7x).
    best = 1
    for d in range(1, min(B, 8) + 1):
        if B % d == 0 and (B // d >= 2 or B == 1):
            best = d
    return best


def interaction_layer(V, L, v_mask, l_mask, params, *,
                      compute_dtype=jnp.bfloat16, block_b=None,
                      vmem_limit_bytes=None):
    # v_mask / l_mask are accepted only for API parity: the reference PyTorch
    # forward() never uses them.
    del v_mask, l_mask
    B, Nv, D = V.shape
    _, Nl, _ = L.shape
    H = params["w1_V"].shape[1]
    K = Nl + Nv
    K_pad = ((K + 127) // 128) * 128            # lane-dense A output block

    if block_b is None:
        block_b = _pick_block_b(B)
    assert B % block_b == 0, (B, block_b)

    cd = compute_dtype
    f32 = jnp.float32

    # Fused V-path first layer: [w1_V | w1_L] so ffn_V and ffn_L share one matmul on V.
    w1_cat = jnp.concatenate([params["w1_V"], params["w1_L"]], axis=1).astype(cd)   # (D, 2H)
    b1_cat = jnp.concatenate([params["b1_V"], params["b1_L"]]).reshape(1, 2 * H).astype(f32)

    args = (
        V.astype(cd), L.astype(cd),
        w1_cat, b1_cat,
        params["w2_V"].astype(cd), params["b2_V"].reshape(1, D).astype(f32),
        params["w1_L"].astype(cd), params["b1_L"].reshape(1, H).astype(f32),
        params["w2_L"].astype(cd), params["b2_L"].reshape(1, D).astype(f32),
    )

    def full(shape):
        return pl.BlockSpec(shape, lambda b: tuple(0 for _ in shape))

    in_specs = [
        pl.BlockSpec((block_b, Nv, D), lambda b: (b, 0, 0)),
        pl.BlockSpec((block_b, Nl, D), lambda b: (b, 0, 0)),
        full((D, 2 * H)), full((1, 2 * H)),
        full((H, D)), full((1, D)),
        full((D, H)), full((1, H)),
        full((H, D)), full((1, D)),
    ]
    out_specs = [
        pl.BlockSpec((block_b, Nv, K_pad), lambda b: (b, 0, 0)),
        pl.BlockSpec((block_b, Nv, D), lambda b: (b, 0, 0)),
    ]
    out_shape = [
        jax.ShapeDtypeStruct((B, Nv, K_pad), f32),
        jax.ShapeDtypeStruct((B, Nv, D), f32),
    ]

    cp_kwargs = dict(dimension_semantics=("parallel",))
    if vmem_limit_bytes is not None:
        cp_kwargs["vmem_limit_bytes"] = vmem_limit_bytes

    A_pad, V_next = pl.pallas_call(
        _interaction_kernel,
        out_shape=out_shape,
        grid_spec=pltpu.PrefetchScalarGridSpec(
            num_scalar_prefetch=0,
            grid=(B // block_b,),
            in_specs=in_specs,
            out_specs=out_specs,
        ),
        compiler_params=pltpu.CompilerParams(**cp_kwargs),
    )(*args)

    A = A_pad if K_pad == K else A_pad[:, :, :K]
    return A, V_next


def init_params(key, input_dim, hidden_dim):
    ks = jax.random.split(key, 8)
    s1 = 1.0 / math.sqrt(input_dim)
    s2 = 1.0 / math.sqrt(hidden_dim)
    return {
        "w1_V": jax.random.uniform(ks[0], (input_dim, hidden_dim), jnp.float32, -s1, s1),
        "b1_V": jax.random.uniform(ks[1], (hidden_dim,), jnp.float32, -s1, s1),
        "w2_V": jax.random.uniform(ks[2], (hidden_dim, input_dim), jnp.float32, -s2, s2),
        "b2_V": jax.random.uniform(ks[3], (input_dim,), jnp.float32, -s2, s2),
        "w1_L": jax.random.uniform(ks[4], (input_dim, hidden_dim), jnp.float32, -s1, s1),
        "b1_L": jax.random.uniform(ks[5], (hidden_dim,), jnp.float32, -s1, s1),
        "w2_L": jax.random.uniform(ks[6], (hidden_dim, input_dim), jnp.float32, -s2, s2),
        "b2_L": jax.random.uniform(ks[7], (input_dim,), jnp.float32, -s2, s2),
    }


def _reference(V, L, params):
    def ffn(x, w1, b1, w2, b2):
        return jnp.maximum(x @ w1 + b1, 0.0) @ w2 + b2
    fv_v = ffn(V, params["w1_V"], params["b1_V"], params["w2_V"], params["b2_V"])
    fl_l = ffn(L, params["w1_L"], params["b1_L"], params["w2_L"], params["b2_L"])
    fl_v = ffn(V, params["w1_L"], params["b1_L"], params["w2_L"], params["b2_L"])
    scale = 1.0 / jnp.sqrt(jnp.float32(V.shape[-1]))
    A = jnp.concatenate([
        jnp.einsum("bqd,bkd->bqk", fv_v, fl_l) * scale,
        jnp.einsum("bqd,bkd->bqk", fv_v, fl_v) * scale], axis=-1)
    P = jax.nn.softmax(A, axis=1)
    V_next = jnp.einsum("bqk,bkd->bqd", P, jnp.concatenate([fl_l, fv_v], axis=1))
    return A, V_next


if __name__ == "__main__":
    B, Nv, Nl, D, H = 4, 8, 8, 32, 32
    key = jax.random.PRNGKey(0)
    kV, kL, kP = jax.random.split(key, 3)
    V = jax.random.normal(kV, (B, Nv, D), jnp.float32)
    L = jax.random.normal(kL, (B, Nl, D), jnp.float32)
    v_mask = jnp.ones((B, Nv), jnp.float32)   # unused by forward (parity with torch API)
    l_mask = jnp.ones((B, Nl), jnp.float32)   # unused by forward

    params = init_params(kP, D, H)
    A_ref, V_next_ref = _reference(V, L, params)

    # Structural check: f32 MXU inputs + exact reciprocal -> tight tolerance.
    A32, V32 = interaction_layer(V, L, v_mask, l_mask, params,
                                 compute_dtype=jnp.float32)
    jax.block_until_ready((A32, V32))
    assert A32.shape == (B, Nv, Nl + Nv) and V32.shape == (B, Nv, D)
    assert jnp.allclose(A32, A_ref, atol=1e-3, rtol=1e-3)
    assert jnp.allclose(V32, V_next_ref, atol=1e-3, rtol=1e-3)

    # Fast path: bf16 MXU inputs (f32 accumulation / softmax), approx reciprocal.
    A, V_next = interaction_layer(V, L, v_mask, l_mask, params)
    jax.block_until_ready((A, V_next))
    assert A.shape == (B, Nv, Nl + Nv) and V_next.shape == (B, Nv, D)
    assert jnp.allclose(A, A_ref, atol=7.5e-2, rtol=7.5e-2)
    assert jnp.allclose(V_next, V_next_ref, atol=7.5e-2, rtol=7.5e-2)

    print("KERNEL_OK")
</pallas_src>

<mosaic_0001>
module attributes {stable_mosaic.version = 11 : i64} {
  func.func @_interaction_kernel(%arg0: i32, %arg1: memref<2x8x32xf32, #tpu.memory_space<vmem>>, %arg2: memref<2x8x32xf32, #tpu.memory_space<vmem>>, %arg3: memref<32x64xf32, #tpu.memory_space<vmem>>, %arg4: memref<1x64xf32, #tpu.memory_space<vmem>>, %arg5: memref<32x32xf32, #tpu.memory_space<vmem>>, %arg6: memref<1x32xf32, #tpu.memory_space<vmem>>, %arg7: memref<32x32xf32, #tpu.memory_space<vmem>>, %arg8: memref<1x32xf32, #tpu.memory_space<vmem>>, %arg9: memref<32x32xf32, #tpu.memory_space<vmem>>, %arg10: memref<1x32xf32, #tpu.memory_space<vmem>>, %arg11: memref<2x8x128xf32, #tpu.memory_space<vmem>>, %arg12: memref<2x8x32xf32, #tpu.memory_space<vmem>>) attributes {dimension_semantics = [#tpu.dimension_semantics<parallel>], iteration_bounds = array<i64: 2>, scalar_prefetch = 0 : i64, scratch_operands = 0 : i64, tpu.core_type = #tpu.core_type<tc>, window_params = [{transform_indices = @transform_0, window_bounds = array<i64: 2, 8, 32>}, {transform_indices = @transform_1, window_bounds = array<i64: 2, 8, 32>}, {pipeline_mode = #tpu.pipeline_mode<synchronous>, transform_indices = @transform_2, window_bounds = array<i64: 32, 64>}, {pipeline_mode = #tpu.pipeline_mode<synchronous>, transform_indices = @transform_3, window_bounds = array<i64: 1, 64>}, {pipeline_mode = #tpu.pipeline_mode<synchronous>, transform_indices = @transform_4, window_bounds = array<i64: 32, 32>}, {pipeline_mode = #tpu.pipeline_mode<synchronous>, transform_indices = @transform_5, window_bounds = array<i64: 1, 32>}, {pipeline_mode = #tpu.pipeline_mode<synchronous>, transform_indices = @transform_6, window_bounds = array<i64: 32, 32>}, {pipeline_mode = #tpu.pipeline_mode<synchronous>, transform_indices = @transform_7, window_bounds = array<i64: 1, 32>}, {pipeline_mode = #tpu.pipeline_mode<synchronous>, transform_indices = @transform_8, window_bounds = array<i64: 32, 32>}, {pipeline_mode = #tpu.pipeline_mode<synchronous>, transform_indices = @transform_9, window_bounds = array<i64: 1, 32>}, {transform_indices = @transform_10, window_bounds = array<i64: 2, 8, 128>}, {transform_indices = @transform_11, window_bounds = array<i64: 2, 8, 32>}]} {
    %c0 = arith.constant 0 : index
    %c0_0 = arith.constant 0 : index
    %c0_1 = arith.constant 0 : index
    %0 = vector.load %arg1[%c0, %c0_0, %c0_1] : memref<2x8x32xf32, #tpu.memory_space<vmem>>, vector<2x8x32xf32>
    %1 = vector.shape_cast %0 : vector<2x8x32xf32> to vector<16x32xf32>
    %c0_2 = arith.constant 0 : index
    %c0_3 = arith.constant 0 : index
    %c0_4 = arith.constant 0 : index
    %2 = vector.load %arg2[%c0_2, %c0_3, %c0_4] : memref<2x8x32xf32, #tpu.memory_space<vmem>>, vector<2x8x32xf32>
    %3 = vector.shape_cast %2 : vector<2x8x32xf32> to vector<16x32xf32>
    %c0_5 = arith.constant 0 : index
    %c0_6 = arith.constant 0 : index
    %4 = vector.load %arg3[%c0_5, %c0_6] : memref<32x64xf32, #tpu.memory_space<vmem>>, vector<32x64xf32>
    %cst = arith.constant dense<0.000000e+00> : vector<16x64xf32>
    %5 = tpu.matmul %1, %4, %cst {dimension_numbers = #tpu.dot_dimension_numbers<[1], [0], [0], [1], [0, 0, 1, 1], [], []>} : vector<16x32xf32>, vector<32x64xf32>, vector<16x64xf32> -> vector<16x64xf32>
    %c0_7 = arith.constant 0 : index
    %c0_8 = arith.constant 0 : index
    %6 = vector.load %arg4[%c0_7, %c0_8] : memref<1x64xf32, #tpu.memory_space<vmem>>, vector<1x64xf32>
    %7 = vector.broadcast %6 : vector<1x64xf32> to vector<16x64xf32>
    %8 = arith.addf %5, %7 : vector<16x64xf32>
    %cst_9 = arith.constant 0.000000e+00 : f32
    %9 = vector.broadcast %cst_9 : f32 to vector<16x64xf32>
    %10 = arith.maximumf %8, %9 : vector<16x64xf32>
    %11 = vector.extract_strided_slice %10 {offsets = [0, 0], sizes = [16, 32], strides = [1, 1]} : vector<16x64xf32> to vector<16x32xf32>
    %c0_10 = arith.constant 0 : index
    %c0_11 = arith.constant 0 : index
    %12 = vector.load %arg5[%c0_10, %c0_11] : memref<32x32xf32, #tpu.memory_space<vmem>>, vector<32x32xf32>
    %cst_12 = arith.constant dense<0.000000e+00> : vector<16x32xf32>
    %13 = tpu.matmul %11, %12, %cst_12 {dimension_numbers = #tpu.dot_dimension_numbers<[1], [0], [0], [1], [0, 0, 1, 1], [], []>} : vector<16x32xf32>, vector<32x32xf32>, vector<16x32xf32> -> vector<16x32xf32>
    %c0_13 = arith.constant 0 : index
    %c0_14 = arith.constant 0 : index
    %14 = vector.load %arg6[%c0_13, %c0_14] : memref<1x32xf32, #tpu.memory_space<vmem>>, vector<1x32xf32>
    %15 = vector.broadcast %14 : vector<1x32xf32> to vector<16x32xf32>
    %16 = arith.addf %13, %15 : vector<16x32xf32>
    %17 = vector.extract_strided_slice %10 {offsets = [0, 32], sizes = [16, 32], strides = [1, 1]} : vector<16x64xf32> to vector<16x32xf32>
    %c0_15 = arith.constant 0 : index
    %c0_16 = arith.constant 0 : index
    %18 = vector.load %arg9[%c0_15, %c0_16] : memref<32x32xf32, #tpu.memory_space<vmem>>, vector<32x32xf32>
    %cst_17 = arith.constant dense<0.000000e+00> : vector<16x32xf32>
    %19 = tpu.matmul %17, %18, %cst_17 {dimension_numbers = #tpu.dot_dimension_numbers<[1], [0], [0], [1], [0, 0, 1, 1], [], []>} : vector<16x32xf32>, vector<32x32xf32>, vector<16x32xf32> -> vector<16x32xf32>
    %c0_18 = arith.constant 0 : index
    %c0_19 = arith.constant 0 : index
    %20 = vector.load %arg10[%c0_18, %c0_19] : memref<1x32xf32, #tpu.memory_space<vmem>>, vector<1x32xf32>
    %21 = vector.broadcast %20 : vector<1x32xf32> to vector<16x32xf32>
    %22 = arith.addf %19, %21 : vector<16x32xf32>
    %c0_20 = arith.constant 0 : index
    %c0_21 = arith.constant 0 : index
    %23 = vector.load %arg7[%c0_20, %c0_21] : memref<32x32xf32, #tpu.memory_space<vmem>>, vector<32x32xf32>
    %cst_22 = arith.constant dense<0.000000e+00> : vector<16x32xf32>
    %24 = tpu.matmul %3, %23, %cst_22 {dimension_numbers = #tpu.dot_dimension_numbers<[1], [0], [0], [1], [0, 0, 1, 1], [], []>} : vector<16x32xf32>, vector<32x32xf32>, vector<16x32xf32> -> vector<16x32xf32>
    %c0_23 = arith.constant 0 : index
    %c0_24 = arith.constant 0 : index
    %25 = vector.load %arg8[%c0_23, %c0_24] : memref<1x32xf32, #tpu.memory_space<vmem>>, vector<1x32xf32>
    %26 = vector.broadcast %25 : vector<1x32xf32> to vector<16x32xf32>
    %27 = arith.addf %24, %26 : vector<16x32xf32>
    %cst_25 = arith.constant 0.000000e+00 : f32
    %28 = vector.broadcast %cst_25 : f32 to vector<16x32xf32>
    %29 = arith.maximumf %27, %28 : vector<16x32xf32>
    %c0_26 = arith.constant 0 : index
    %c0_27 = arith.constant 0 : index
    %30 = vector.load %arg9[%c0_26, %c0_27] : memref<32x32xf32, #tpu.memory_space<vmem>>, vector<32x32xf32>
    %cst_28 = arith.constant dense<0.000000e+00> : vector<16x32xf32>
    %31 = tpu.matmul %29, %30, %cst_28 {dimension_numbers = #tpu.dot_dimension_numbers<[1], [0], [0], [1], [0, 0, 1, 1], [], []>} : vector<16x32xf32>, vector<32x32xf32>, vector<16x32xf32> -> vector<16x32xf32>
    %c0_29 = arith.constant 0 : index
    %c0_30 = arith.constant 0 : index
    %32 = vector.load %arg10[%c0_29, %c0_30] : memref<1x32xf32, #tpu.memory_space<vmem>>, vector<1x32xf32>
    %33 = vector.broadcast %32 : vector<1x32xf32> to vector<16x32xf32>
    %34 = arith.addf %31, %33 : vector<16x32xf32>
    %35 = vector.shape_cast %16 : vector<16x32xf32> to vector<2x8x32xf32>
    %36 = vector.shape_cast %22 : vector<16x32xf32> to vector<2x8x32xf32>
    %37 = vector.shape_cast %34 : vector<16x32xf32> to vector<2x8x32xf32>
    %cst_31 = arith.constant 0.000000e+00 : f32
    %38 = vector.broadcast %cst_31 : f32 to vector<2x112x32xf32>
    %39 = tpu.concatenate %37, %36, %38 in 1 : vector<2x8x32xf32>, vector<2x8x32xf32>, vector<2x112x32xf32> -> vector<2x128x32xf32>
    %40 = tpu.concatenate %37, %35, %38 in 1 : vector<2x8x32xf32>, vector<2x8x32xf32>, vector<2x112x32xf32> -> vector<2x128x32xf32>
    "tpu.trace_start"() <{level = 10 : i32, message = "bqd,bkd->bqk"}> : () -> ()
    %cst_32 = arith.constant dense<0.000000e+00> : vector<2x8x128xf32>
    %41 = tpu.matmul %35, %39, %cst_32 {dimension_numbers = #tpu.dot_dimension_numbers<[2], [2], [1], [1], [0, 0, 0, 1, 1, 1], [0], [0]>} : vector<2x8x32xf32>, vector<2x128x32xf32>, vector<2x8x128xf32> -> vector<2x8x128xf32>
    "tpu.trace_stop"() : () -> ()
    %cst_33 = arith.constant 0.176776692 : f32
    %42 = vector.broadcast %cst_33 : f32 to vector<2x8x128xf32>
    %43 = arith.mulf %41, %42 : vector<2x8x128xf32>
    %c0_34 = arith.constant 0 : index
    %c0_35 = arith.constant 0 : index
    %c0_36 = arith.constant 0 : index
    %44 = vector.load %arg11[%c0_34, %c0_35, %c0_36] : memref<2x8x128xf32, #tpu.memory_space<vmem>>, vector<2x8x128xf32>
    tpu.vector_store %arg11[%c0_34, %c0_35, %c0_36], %43 {strides = array<i32>} : memref<2x8x128xf32, #tpu.memory_space<vmem>>, vector<2x8x128xf32>,
    %cst_37 = arith.constant dense<0xFF800000> : vector<2x128xf32>
    %45 = vector.multi_reduction <maximumf>, %43, %cst_37 [1] : vector<2x8x128xf32> to vector<2x128xf32>
    %46 = vector.shape_cast %45 : vector<2x128xf32> to vector<2x1x128xf32>
    %47 = vector.broadcast %46 : vector<2x1x128xf32> to vector<2x8x128xf32>
    %48 = arith.subf %43, %47 : vector<2x8x128xf32>
    %49 = math.exp %48 : vector<2x8x128xf32>
    %cst_38 = arith.constant dense<0.000000e+00> : vector<2x128xf32>
    %50 = vector.multi_reduction <add>, %49, %cst_38 [1] : vector<2x8x128xf32> to vector<2x128xf32>
    %51 = vector.shape_cast %50 : vector<2x128xf32> to vector<2x1x128xf32>
    %52 = tpu.reciprocal %51 : vector<2x1x128xf32> -> vector<2x1x128xf32>
    %53 = vector.broadcast %52 : vector<2x1x128xf32> to vector<2x8x128xf32>
    %54 = arith.mulf %49, %53 : vector<2x8x128xf32>
    "tpu.trace_start"() <{level = 10 : i32, message = "bqk,bkd->bqd"}> : () -> ()
    %cst_39 = arith.constant dense<0.000000e+00> : vector<2x8x32xf32>
    %55 = tpu.matmul %54, %40, %cst_39 {dimension_numbers = #tpu.dot_dimension_numbers<[2], [1], [1], [2], [0, 0, 0, 1, 1, 2], [0], [0]>} : vector<2x8x128xf32>, vector<2x128x32xf32>, vector<2x8x32xf32> -> vector<2x8x32xf32>
    "tpu.trace_stop"() : () -> ()
    %c0_40 = arith.constant 0 : index
    %c0_41 = arith.constant 0 : index
    %c0_42 = arith.constant 0 : index
    %56 = vector.load %arg12[%c0_40, %c0_41, %c0_42] : memref<2x8x32xf32, #tpu.memory_space<vmem>>, vector<2x8x32xf32>
    tpu.vector_store %arg12[%c0_40, %c0_41, %c0_42], %55 {strides = array<i32>} : memref<2x8x32xf32, #tpu.memory_space<vmem>>, vector<2x8x32xf32>,
    return
  }
  func.func @transform_0(%arg0: i32) -> (i32, i32, i32) {
    %c0_i32 = arith.constant 0 : i32
    %c0_i32_0 = arith.constant 0 : i32
    %c0_i32_1 = arith.constant 0 : i32
    return %arg0, %c0_i32, %c0_i32_0 : i32, i32, i32
  }
  func.func @transform_1(%arg0: i32) -> (i32, i32, i32) {
    %c0_i32 = arith.constant 0 : i32
    %c0_i32_0 = arith.constant 0 : i32
    %c0_i32_1 = arith.constant 0 : i32
    return %arg0, %c0_i32, %c0_i32_0 : i32, i32, i32
  }
  func.func @transform_2(%arg0: i32) -> (i32, i32) {
    %c0_i32 = arith.constant 0 : i32
    %c0_i32_0 = arith.constant 0 : i32
    %c0_i32_1 = arith.constant 0 : i32
    return %c0_i32, %c0_i32_0 : i32, i32
  }
  func.func @transform_3(%arg0: i32) -> (i32, i32) {
    %c0_i32 = arith.constant 0 : i32
    %c0_i32_0 = arith.constant 0 : i32
    %c0_i32_1 = arith.constant 0 : i32
    return %c0_i32, %c0_i32_0 : i32, i32
  }
  func.func @transform_4(%arg0: i32) -> (i32, i32) {
    %c0_i32 = arith.constant 0 : i32
    %c0_i32_0 = arith.constant 0 : i32
    %c0_i32_1 = arith.constant 0 : i32
    return %c0_i32, %c0_i32_0 : i32, i32
  }
  func.func @transform_5(%arg0: i32) -> (i32, i32) {
    %c0_i32 = arith.constant 0 : i32
    %c0_i32_0 = arith.constant 0 : i32
    %c0_i32_1 = arith.constant 0 : i32
    return %c0_i32, %c0_i32_0 : i32, i32
  }
  func.func @transform_6(%arg0: i32) -> (i32, i32) {
    %c0_i32 = arith.constant 0 : i32
    %c0_i32_0 = arith.constant 0 : i32
    %c0_i32_1 = arith.constant 0 : i32
    return %c0_i32, %c0_i32_0 : i32, i32
  }
  func.func @transform_7(%arg0: i32) -> (i32, i32) {
    %c0_i32 = arith.constant 0 : i32
    %c0_i32_0 = arith.constant 0 : i32
    %c0_i32_1 = arith.constant 0 : i32
    return %c0_i32, %c0_i32_0 : i32, i32
  }
  func.func @transform_8(%arg0: i32) -> (i32, i32) {
    %c0_i32 = arith.constant 0 : i32
    %c0_i32_0 = arith.constant 0 : i32
    %c0_i32_1 = arith.constant 0 : i32
    return %c0_i32, %c0_i32_0 : i32, i32
  }
  func.func @transform_9(%arg0: i32) -> (i32, i32) {
    %c0_i32 = arith.constant 0 : i32
    %c0_i32_0 = arith.constant 0 : i32
    %c0_i32_1 = arith.constant 0 : i32
    return %c0_i32, %c0_i32_0 : i32, i32
  }
  func.func @transform_10(%arg0: i32) -> (i32, i32, i32) {
    %c0_i32 = arith.constant 0 : i32
    %c0_i32_0 = arith.constant 0 : i32
    %c0_i32_1 = arith.constant 0 : i32
    return %arg0, %c0_i32, %c0_i32_0 : i32, i32, i32
  }
  func.func @transform_11(%arg0: i32) -> (i32, i32, i32) {
    %c0_i32 = arith.constant 0 : i32
    %c0_i32_0 = arith.constant 0 : i32
    %c0_i32_1 = arith.constant 0 : i32
    return %arg0, %c0_i32, %c0_i32_0 : i32, i32, i32
  }
}

</mosaic_0001>

<bundles_post_ra>
// kernel: tpu_custom_call.1
= control target key start
LH: loop header
LB: loop body
LE: loop exit
PB: predicated region body
PF: predicated region fallthrough
CT: control target
= control target key end

     0   :  { %s2675_s0 = inlined_call_operand.hbm [shape: f32[4,8,32], index: 0, kind: input, shape index: {}]   ;;  %s2676_s1 = inlined_call_operand.hbm [shape: f32[4,8,32], index: 1, kind: input, shape index: {}]   ;;  %s2677_s2 = inlined_call_operand.hbm [shape: f32[32,64], index: 2, kind: input, shape index: {}]   ;;  %s2678_s3 = inlined_call_operand.vmem [shape: f32[1,64], index: 3, kind: input, shape index: {}]   ;;  %s2679_s4 = inlined_call_operand.hbm [shape: f32[32,32], index: 4, kind: input, shape index: {}]   ;;  %s2680_s5 = inlined_call_operand.vmem [shape: f32[1,32], index: 5, kind: input, shape index: {}]   ;;  %s2681_s6 = inlined_call_operand.hbm [shape: f32[32,32], index: 6, kind: input, shape index: {}]   ;;  %s2682_s7 = inlined_call_operand.vmem [shape: f32[1,32], index: 7, kind: input, shape index: {}]   ;;  %s2683_s8 = inlined_call_operand.hbm [shape: f32[32,32], index: 8, kind: input, shape index: {}]   ;;  %s2684_s9 = inlined_call_operand.vmem [shape: f32[1,32], index: 9, kind: input, shape index: {}]   ;;  %s2685_s10 = inlined_call_operand.hbm [shape: f32[4,8,128], index: 10, kind: output, shape index: {0}]   ;;  %s2686_s11 = inlined_call_operand.hbm [shape: f32[4,8,32], index: 11, kind: output, shape index: {1}]  }
   0x1   :  { %2698 = sst [smem:[#allocation25_spill]] %s2675_s0 }
   0x2   :  { %2699 = sst [smem:[#allocation26_spill]] %s2677_s2 }
   0x3   :  { %2700 = sst [smem:[#allocation27_spill]] %s2679_s4 }
   0x4   :  { %2701 = sst [smem:[#allocation28_spill]] %s2684_s9 }
   0x5   :  { %2702 = sst [smem:[#allocation29_spill]] %s2685_s10 }
   0x6   :  { %2703 = sst [smem:[#allocation30_spill]] %s2686_s11 }
   0x7   :  { %17 = vsyncpa [#allocation3], 0 }
   0x8   :  { %19 = vsyncpa [#allocation3 + $0x1], 0 }
   0x9   :  { %20 = vsyncpa [#allocation6], 0 }
   0xa   :  { %22 = vsyncpa [#allocation6 + $0x1], 0 }
   0xb   :  { %23 = vsyncpa [#allocation9], 0 }
   0xc   :  { %24 = vsyncpa [#allocation12], 0 }
   0xd   :  { %25 = vsyncpa [#allocation4], 0 }
   0xe   :  { %27 = vsyncpa [#allocation4 + $0x1], 0 }
   0xf   :  { %28 = vsyncpa [#allocation15], 0 }
  0x10   :  { %30 = vsyncpa [#allocation15 + $0x1], 0  ;;  %s2230_s17 = smov 0   ;;  %s2232_s18 = smov 0  }
  0x11   :  { %s2234_s19 = smov 0   ;;  %s2236_s20 = smov 0  }
  0x12 LB: > { %2704 = sst [smem:[#allocation23_spill]] %s2140_s17  ;;  %s2251_s21 = sadd.s32 4294967295, %s2152_s20   ;;  %s2152_s20 = sphi %s2236_s20, %s2737_s20   ;;  %s2148_s19 = sphi %s2234_s19, %s2736_s19   ;;  %s2144_s18 = sphi %s2232_s18, %s2735_s18   ;;  %s2140_s17 = sphi %s2230_s17, %s2734_s17  }
  0x13   : > { %s1520_s22 = sadd.s32 4294967294, %s2152_s20   ;;  %p56_p0 = scmp.ne.s32.totalorder %s2144_s18, %s2140_s17 }
  0x14   : > { %p2688_p1 = scmp.eq.s32.totalorder %s2251_s21, 0  ;;  %p280_p3 = scmp.eq.s32.totalorder %s1520_s22, 1 }
  0x15   : > { %p1521_p5 = scmp.ge.s32.totalorder %s2152_s20, 1  ;;  %p313_p7 = scmp.lt.s32.totalorder %s2152_s20, 3 }
  0x16   : > { %p2260_p4 = por %p2688_p1, %p56_p0  ;;  %p2265_p6 = por %p280_p3, %p56_p0 }
  0x17   : > { %p2270_p8 = pnand %p1521_p5, %p313_p7  ;;  %s2154_s26 = smov [#allocation7]  }
  0x18   : > { %s2705_s23 = scalar_select %p2260_p4, 1, 0 }
  0x19   : > { %s2706_s24 = scalar_select %p2265_p6, 1, 0 }
  0x1a   : > { %s2708_s25 = scalar_select %p2270_p8, 1, 0 }
  0x1b   : > { %2707 = sst [smem:[#allocation24_spill]] %s2706_s24  ;;  %s325_s27 = sshll.u32 %s2154_s26, 4  ;;  %s2274_s27 = int_to_ptr.vmem [resolvable:$true] %s325_s27 }
  0x1c   : > { %p1777_p9 = pneg %p2270_p8  ;;  %s2155_s29 = smov [#allocation8]  }
  0x1d   : > { %s341_s30 = sshll.u32 %s2155_s29, 4  ;;  %s2156_s12 = smov [#allocation10]   ;;  %s2285_s30 = int_to_ptr.vmem [resolvable:$true] %s341_s30 }
  0x1e   : > { %p2281_p11 = pnand %p1777_p9, %p2688_p1  ;;  %s2287_s13 = sshll.u32 %s2156_s12, 4  ;;  %s358_s13 = int_to_ptr.vmem [resolvable:$true] %s2287_s13 }
  0x1f   : > { %s2710_s2 = sld [smem:[#allocation26_spill]] }
  0x20   : > { %p2297_p13 = pneg %p2281_p11 }
  0x25   : > { %s1866_s16 = scalar_lea.hbm %s2710_s2, 512 }
  0x26   : > { %p1867_p12 = scmp.ne.s32.totalorder %s2710_s2, %s1866_s16  ;;  %p1873_p5 = scmp.lt.u32.totalorder %s1866_s16, %s2710_s2 }
  0x28   : > { %p1869_p0 = pnand %p2297_p13, %p1867_p12 }
  0x2a   : > { %p1870_p3 = pneg %p1869_p0 }
  0x2c   : > { %p1875_p7 = pnand %p1873_p5, %p1870_p3 }
  0x2e   : > { %1878 = shalt.err (!%p1875_p7)
}
  0x2f   : > { %s1879_s14 = scalar_lea.vmem %s2274_s27, 512  ;;  %p1887_p2 = scmp.lt.s32.totalorder %s2274_s27, %s2274_s27 }
  0x30   : > { %p1880_p9 = scmp.ne.s32.totalorder %s2274_s27, %s1879_s14  ;;  %p1888_p6 = scmp.lt.s32.totalorder %s1879_s14, %s1879_s14 }
  0x32   : > { %p1882_p10 = pnand %p1880_p9, %p2297_p13  ;;  %p1889_p12 = por %p1888_p6, %p1887_p2 }
  0x34   : > { %p1883_p1 = pneg %p1882_p10 }
  0x36   : > { %p1890_p0 = pnand %p1889_p12, %p1883_p1 }
  0x38   : > { %1893 = shalt.err (!%p1890_p0)
}
  0x39   : > { %s2694_s15 = smov 128   ;;  %s2696_s16 = smov 8  }
  0x3a   : > { %1780 = dma.hbm_to_vmem [thread:$0]  (!%p2281_p11), %s2710_s2, 512, %s2274_s27, [#allocation6], %s2694_s15, %s2694_s15, %s2696_s16  }
  0x3b   : > { %s2712_s4 = sld [smem:[#allocation27_spill]] }
  0x41   : > { %s1894_s14 = scalar_lea.hbm %s2712_s4, 512 }
  0x42   : > { %p1895_p1 = scmp.ne.s32.totalorder %s2712_s4, %s1894_s14  ;;  %p1901_p10 = scmp.lt.u32.totalorder %s1894_s14, %s2712_s4 }
  0x44   : > { %p1897_p2 = pnand %p1895_p1, %p2297_p13 }
  0x46   : > { %p1898_p6 = pneg %p1897_p2 }
  0x48   : > { %p1903_p3 = pnand %p1901_p10, %p1898_p6 }
  0x4a   : > { %1906 = shalt.err (!%p1903_p3)
}
  0x4b   : > { %s1907_s27 = scalar_lea.vmem %s2285_s30, 512  ;;  %p1915_p12 = scmp.lt.s32.totalorder %s2285_s30, %s2285_s30 }
  0x4c   : > { %p1908_p5 = scmp.ne.s32.totalorder %s2285_s30, %s1907_s27  ;;  %p1916_p0 = scmp.lt.s32.totalorder %s1907_s27, %s1907_s27 }
  0x4e   : > { %p1910_p7 = pnand %p1908_p5, %p2297_p13  ;;  %p1917_p1 = por %p1916_p0, %p1915_p12 }
  0x50   : > { %p1911_p9 = pneg %p1910_p7 }
  0x52   : > { %p1918_p2 = pnand %p1917_p1, %p1911_p9 }
  0x54   : > { %1921 = shalt.err (!%p1918_p2)
}
  0x55   : > { %1783 = dma.hbm_to_vmem [thread:$0]  (!%p2281_p11), %s2712_s4, 512, %s2285_s30, [#allocation9], %s2694_s15, %s2694_s15, %s2696_s16  }
  0x56   : > { %s1922_s22 = scalar_lea.hbm %s2681_s6, 512 }
  0x57   : > { %p1923_p6 = scmp.ne.s32.totalorder %s2681_s6, %s1922_s22  ;;  %p1929_p5 = scmp.lt.u32.totalorder %s1922_s22, %s2681_s6 }
  0x59   : > { %p1925_p10 = pnand %p1923_p6, %p2297_p13 }
  0x5b   : > { %p1926_p3 = pneg %p1925_p10 }
  0x5d   : > { %p1931_p7 = pnand %p1929_p5, %p1926_p3 }
  0x5f   : > { %1934 = shalt.err (!%p1931_p7)
}
  0x60   : > { %s1935_s27 = scalar_lea.vmem %s358_s13, 512  ;;  %p1943_p1 = scmp.lt.s32.totalorder %s358_s13, %s358_s13 }
  0x61   : > { %p1936_p9 = scmp.ne.s32.totalorder %s358_s13, %s1935_s27  ;;  %p1944_p2 = scmp.lt.s32.totalorder %s1935_s27, %s1935_s27 }
  0x63   : > { %p1938_p12 = pnand %p1936_p9, %p2297_p13  ;;  %p1945_p4 = por %p1944_p2, %p1943_p1 }
  0x65   : > { %p1939_p0 = pneg %p1938_p12 }
  0x67   : > { %p1946_p8 = pnand %p1945_p4, %p1939_p0 }
  0x69   : > { %1949 = shalt.err (!%p1946_p8)
}
  0x6a   : > { %1786 = dma.hbm_to_vmem [thread:$0]  (!%p2281_p11), %s2681_s6, 512, %s358_s13, [#allocation9], %s2694_s15, %s2694_s15, %s2696_s16  }
  0x6b   : > { %s2159_s10 = smov [#allocation11]   ;;  %s1950_s26 = scalar_lea.hbm %s2683_s8, 512 }
  0x6c   : > { %s373_s11 = sshll.u32 %s2159_s10, 4  ;;  %p1951_p4 = scmp.ne.s32.totalorder %s2683_s8, %s1950_s26  ;;  %s374_s11 = int_to_ptr.vmem [resolvable:$true] %s373_s11 }
  0x6d   : > { %p1957_p10 = scmp.lt.u32.totalorder %s1950_s26, %s2683_s8 }
  0x6e   : > { %p1953_p8 = pnand %p1951_p4, %p2297_p13 }
  0x70   : > { %p1954_p6 = pneg %p1953_p8 }
  0x72   : > { %p1959_p3 = pnand %p1957_p10, %p1954_p6 }
  0x74   : > { %1962 = shalt.err (!%p1959_p3)
}
  0x75   : > { %s1963_s13 = scalar_lea.vmem %s374_s11, 512  ;;  %p1971_p12 = scmp.lt.s32.totalorder %s374_s11, %s374_s11 }
  0x76   : > { %p1964_p5 = scmp.ne.s32.totalorder %s374_s11, %s1963_s13  ;;  %p1972_p0 = scmp.lt.s32.totalorder %s1963_s13, %s1963_s13 }
  0x78   : > { %p1966_p7 = pnand %p1964_p5, %p2297_p13  ;;  %p1973_p1 = por %p1972_p0, %p1971_p12 }
  0x7a   : > { %p1967_p9 = pneg %p1966_p7 }
  0x7c   : > { %p1974_p2 = pnand %p1973_p1, %p1967_p9 }
  0x7e   : > { %1977 = shalt.err (!%p1974_p2)
}
  0x7f   : > { %1789 = dma.hbm_to_vmem [thread:$0]  (!%p2281_p11), %s2683_s8, 512, %s374_s11, [#allocation12], %s2694_s15, %s2694_s15, %s2696_s16  }
  0x80   : > { %s2391_s24 = sadd.s32 1, %s2152_s20   ;;  %s43_s28 = sadd.s32 1, %s2148_s19 }
  0x81   : > { %s40_s10 = ssub.s32 %s2152_s20, %s2391_s24  ;;  %p50_p13 = scmp.ne.s32.totalorder %s2148_s19, %s2144_s18 }
  0x82   : > { %p41_p4 = scmp.eq.s32.totalorder %s40_s10, 0  ;;  %p51_p8 = scmp.eq.s32.totalorder %s2152_s20, 0 }
  0x83   : > { %p2713_p6 = scmp.eq.s32.totalorder %s2251_s21, 1  ;;  %p1808_p3 = scmp.lt.s32.totalorder %s2152_s20, 2 }
  0x84   : > { %s2407_s22 = scalar_select %p41_p4, %s2148_s19, %s43_s28  }
  0x85   : > { %p2401_p10 = por %p2713_p6, %p50_p13  ;;  %p52_p5 = por %p51_p8, %p50_p13 }
  0x86   : > { %s390_s26 = sand.u32 1, %s2148_s19   ;;  %s1570_s11 = sshll.u32 %s2152_s20, 8 }
  0x87   : > { %s1527_s29 = sshll.u32 %s390_s26, 4  ;;  %s2715_s0 = sld [smem:[#allocation25_spill]] }
  0x88   : > { %s394_s13 = scalar_lea.vmem [#allocation2], %s1527_s29  ;;  %p2418_p11 = pnand %p1808_p3, %p52_p5 }
  0x89   : > { %s401_s30 = sshll.u32 %s394_s13, 4  ;;  %s2425_s12 = scalar_lea.hbm %s2676_s1, %s1570_s11  ;;  %s2416_s30 = int_to_ptr.vmem [resolvable:$true] %s401_s30 }
  0x8a   : > { %s415_s14 = scalar_lea.vmem [#allocation5], %s1527_s29  ;;  %s2429_s16 = scalar_lea.sflag [#allocation3], %s390_s26 }
  0x8b   : > { %s2427_s15 = sshll.u32 %s415_s14, 4  ;;  %p1980_p9 = pneg %p2418_p11  ;;  %s2461_s15 = int_to_ptr.vmem [resolvable:$true] %s2427_s15 }
  0x8d   : > { %s2414_s27 = scalar_lea.hbm %s2715_s0, %s1570_s11  ;;  %s1983_s28 = scalar_lea.hbm %s2715_s0, 512 }
  0x8e   : > { %s1978_s13 = scalar_lea.hbm %s2414_s27, 256  ;;  %p1984_p1 = scmp.lt.u32.totalorder %s2414_s27, %s2715_s0 }
  0x8f   : > { %p1979_p7 = scmp.ne.s32.totalorder %s2414_s27, %s1978_s13  ;;  %p1985_p2 = scmp.lt.u32.totalorder %s1983_s28, %s1978_s13 }
  0x90   : > { %p1987_p4 = scmp.lt.u32.totalorder %s1978_s13, %s2414_s27 }
  0x91   : > { %p1981_p12 = pnand %p1980_p9, %p1979_p7  ;;  %p1986_p13 = por %p1985_p2, %p1984_p1 }
  0x93   : > { %p1982_p0 = pneg %p1981_p12  ;;  %p1988_p8 = por %p1987_p4, %p1986_p13 }
  0x95   : > { %p1989_p6 = pnand %p1988_p8, %p1982_p0 }
  0x97   : > { %1992 = shalt.err (!%p1989_p6)
}
  0x98   : > { %s1993_s26 = scalar_lea.vmem %s2416_s30, 256  ;;  %s2160_s2 = smov [#allocation2]  }
  0x99   : > { %p1994_p3 = scmp.ne.s32.totalorder %s2416_s30, %s1993_s26  ;;  %s1998_s4 = sshll.u32 %s2160_s2, 4  ;;  %s1999_s4 = int_to_ptr.vmem [resolvable:$false] %s1998_s4 }
  0x9a   : > { %s2000_s29 = scalar_lea.vmem %s1999_s4, 512  ;;  %p2001_p12 = scmp.lt.s32.totalorder %s2416_s30, %s1999_s4 }
  0x9b   : > { %p1996_p5 = pnand %p1994_p3, %p1980_p9  ;;  %p2002_p1 = scmp.lt.s32.totalorder %s2000_s29, %s1993_s26 }
  0x9d   : > { %p1997_p7 = pneg %p1996_p5  ;;  %p2003_p2 = por %p2002_p1, %p2001_p12 }
  0x9f   : > { %p2004_p13 = pnand %p2003_p2, %p1997_p7 }
  0xa1   : > { %2007 = shalt.err (!%p2004_p13)
}
  0xa2   : > { %s2717_s14 = smov 8   ;;  %s2718_s13 = smov 128  }
  0xa3   : > { %1793 = dma.hbm_to_vmem [thread:$0]  (!%p2418_p11), %s2414_s27, 256, %s2416_s30, %s2429_s16, %s2718_s13, %s2718_s13, %s2717_s14  }
  0xa4   : > { %s411_s28 = sand.u32 1, %s2152_s20   ;;  %s2008_s11 = scalar_lea.hbm %s2425_s12, 256 }
  0xa5   : > { %s2464_s10 = scalar_lea.sflag [#allocation6], %s411_s28  ;;  %p2009_p0 = scmp.ne.s32.totalorder %s2425_s12, %s2008_s11 }
  0xa6   : > { %s2013_s4 = scalar_lea.hbm %s2676_s1, 512  ;;  %p2014_p6 = scmp.lt.u32.totalorder %s2425_s12, %s2676_s1 }
  0xa7   : > { %p2011_p4 = pnand %p2009_p0, %p1980_p9  ;;  %p2015_p3 = scmp.lt.u32.totalorder %s2013_s4, %s2008_s11 }
  0xa8   : > { %p2017_p7 = scmp.lt.u32.totalorder %s2008_s11, %s2425_s12 }
  0xa9   : > { %p2012_p8 = pneg %p2011_p4  ;;  %p2016_p5 = por %p2015_p3, %p2014_p6 }
  0xab   : > { %p2018_p12 = por %p2017_p7, %p2016_p5 }
  0xad   : > { %p2019_p1 = pnand %p2018_p12, %p2012_p8 }
  0xaf   : > { %2022 = shalt.err (!%p2019_p1)
}
  0xb0   : > { %s2023_s16 = scalar_lea.vmem %s2461_s15, 256  ;;  %s2161_s27 = smov [#allocation5]  }
  0xb1   : > { %p2024_p2 = scmp.ne.s32.totalorder %s2461_s15, %s2023_s16  ;;  %s2028_s30 = sshll.u32 %s2161_s27, 4  ;;  %s2029_s30 = int_to_ptr.vmem [resolvable:$false] %s2028_s30 }
  0xb2   : > { %s2030_s0 = scalar_lea.vmem %s2029_s30, 512  ;;  %p2031_p4 = scmp.lt.s32.totalorder %s2461_s15, %s2029_s30 }
  0xb3   : > { %p2026_p13 = pnand %p2024_p2, %p1980_p9  ;;  %p2032_p6 = scmp.lt.s32.totalorder %s2030_s0, %s2023_s16 }
  0xb5   : > { %p2027_p0 = pneg %p2026_p13  ;;  %p2033_p3 = por %p2032_p6, %p2031_p4 }
  0xb7   : > { %p2034_p5 = pnand %p2033_p3, %p2027_p0 }
  0xb9   : > { %2037 = shalt.err (!%p2034_p5)
}
  0xba   : > { %1796 = dma.hbm_to_vmem [thread:$0]  (!%p2418_p11), %s2425_s12, 256, %s2461_s15, %s2464_s10, %s2718_s13, %s2718_s13, %s2717_s14  }
  0xbb   : > { %p2719_p9 = scmp.ne.s32.totalorder %s2708_s25, 0 }
  0xbc   : > { %s2496_s28 = sand.u32 (!%p2719_p9), 1, %s2144_s18   ;;  %p2720_p8 = scmp.ne.s32.totalorder (!%p2719_p9), %s2705_s23, 0 }
  0xbd   : > { %434 = sbr.rel (%p2719_p9) target bundleno = 1385 (0x569), region = 60  ;;  %s2499_s11 = sshll.u32 (!%p2719_p9), %s2496_s28, 4 }
  0xbe   : > { %s437_s9 = scalar_lea.sflag (!%p2719_p9), [#allocation3], %s2496_s28  ;;  %s440_s26 = scalar_lea.vmem (!%p2719_p9), [#allocation2], %s2499_s11 }
  0xc4   : > { %2111 = dma.done.wait (%p2720_p8), %s437_s9, 256  }
  0xc5   : > { %2113 = vsyncadd (%p2720_p8), %s437_s9, 4294967040  ;;  %s445_s25 = sand.u32 1, %s2251_s21   ;;  %s449_s12 = scalar_lea.vmem [#allocation5], %s2499_s11 }
  0xc6   : > { %s446_s15 = scalar_lea.sflag [#allocation6], %s445_s25 }
  0xc7   : > { %2115 = dma.done.wait (%p2720_p8), %s446_s15, 256  }
  0xc8   : > { %2117 = vsyncadd (%p2720_p8), %s446_s15, 4294967040  ;;  %p2721_p11 = scmp.eq.s32.totalorder %s2251_s21, 0 }
  0xca   : > { %2119 = dma.done.wait (%p2721_p11), [#allocation6], 512   ;;  %p2722_p7 = pmov %p2721_p11 }
  0xcc   : > { %2121 = vsyncadd (%p2722_p7), [#allocation6], 4294966784  ;;  %p2723_p12 = pmov %p2722_p7 }
  0xcd   : > { %p2724_p1 = pmov %p2722_p7 }
  0xce   : > { %2123 = dma.done.wait (%p2723_p12), [#allocation9], 1024  }
  0xcf   : > { %2125 = vsyncadd (%p2724_p1), [#allocation9], 4294966272  ;;  %p2725_p2 = pmov %p2724_p1 }
  0xd0   : > { %p2726_p13 = pmov %p2724_p1 }
  0xd1   : > { %2127 = dma.done.wait (%p2725_p2), [#allocation12], 512  }
  0xd2   : > { %2129 = vsyncadd (%p2726_p13), [#allocation12], 4294966784  ;;  %vm533_vm0 = vcmask 261120   ;;  %v522_v0 = vld [vmem:[#allocation7] sm:$0xff]  ;;  %v523_v1 = vld [vmem:[#allocation7 + $0x8] sm:$0xff]  ;;  %s2162_s13 = smov 96  }
  0xd3   : > { %v524_v2 = vld [vmem:[#allocation7 + $0x10] sm:$0xff]  ;;  %v1699_v3 = vpack.c.bf16 %v523_v1, %v522_v0  ;;  %v525_v4 = vld [vmem:[#allocation7 + $0x18] sm:$0xff]  ;;  %v617_v7 = vld [vmem:[#allocation8] sm:$0xff]  ;;  %v2163_v46 = vmov 0.0|0.0   ;;  %vm2164_vm1 = vmmov 0   ;;  %v2165_v47 = vmov 0.0  }
  0xd4   : > { %v518_v5 = vld [vmem:[%s440_s26] sm:$0xff]  ;;  %v1703_v6 = vpack.c.bf16 %v525_v4, %v524_v2  ;;  %v618_v8 = vld [vmem:[#allocation8 + $0x8] sm:$0xff]  ;;  %v620_v12 = vld [vmem:[#allocation8 + $0x18] sm:$0xff]  ;;  %s2727_s30 = sld [smem:[#allocation28_spill]]  ;;  %s2574_s0 = scalar_lea.vmem [#allocation13], %s2499_s11 }
  0xd5   : > { %1624 = vmatprep.mubr.msk.f32.mxu0 %vm533_vm0, %v518_v5  ;;  %1700 = vmatprep.subr.bf16.mxu0 %v1699_v3  ;;  %v1707_v9 = vpack.c.bf16 %v618_v8, %v617_v7  ;;  %v519_v10 = vld [vmem:[%s440_s26 + $0x8] sm:$0xff]  ;;  %v619_v11 = vld [vmem:[#allocation8 + $0x10] sm:$0xff]  ;;  %v803_v14 = vld [vmem:[#allocation10] sm:$0xff]  ;;  %s1338_s9 = sshll.u32 %s2574_s0, 4  ;;  %s1572_s26 = sshll.u32 %s2251_s21, 8  ;;  %s2581_s9 = int_to_ptr.vmem [resolvable:$true] %s1338_s9 }
  0xd6   : > { %1702 = vmatpush3.bf16.msra.mxu0 %v1699_v3  ;;  %v1711_v13 = vpack.c.bf16 %v620_v12, %v619_v11  ;;  %v804_v15 = vld [vmem:[#allocation10 + $0x8] sm:$0xff]  ;;  %v709_v17 = vld [vmem:[#allocation11] sm:$0xff]  ;;  %v711_v20 = vld [vmem:[#allocation11 + $0x10] sm:$0xff]  ;;  %s1320_s14 = scalar_lea.sflag [#allocation4], %s2496_s28  ;;  %s2166_s10 = smov [#allocation13]  }
  0xd7   : > { %1704 = vmatprep.subr.bf16.mxu0 %v1703_v6  ;;  %1708 = vmatprep.subr.bf16.mxu1 %v1707_v9  ;;  %v1723_v16 = vpack.c.bf16 %v804_v15, %v803_v14  ;;  %v710_v18 = vld [vmem:[#allocation11 + $0x8] sm:$0xff]  ;;  %v712_v21 = vld [vmem:[#allocation11 + $0x18] sm:$0xff]  ;;  %v1542_v23 = vld [vmem:[%s2678_s3] ss:$0 sm:$0xff]  ;;  %s2042_s2 = sshll.u32 %s2166_s10, 4  ;;  %s2043_s2 = int_to_ptr.vmem [resolvable:$false] %s2042_s2 }
  0xd8   : > { %1710 = vmatpush3.bf16.msra.mxu1 %v1707_v9  ;;  %v1715_v19 = vpack.c.bf16 %v710_v18, %v709_v17  ;;  %v1719_v22 = vpack.c.bf16 %v712_v21, %v711_v20  ;;  %v805_v28 = vld [vmem:[#allocation10 + $0x10] sm:$0xff]  ;;  %v806_v29 = vld [vmem:[#allocation10 + $0x18] sm:$0xff]  ;;  %v1551_v39 = vld [vmem:[%s2682_s7] ss:$0 sm:$0xff]  ;;  %s2044_s4 = scalar_lea.vmem %s2043_s2, 512  ;;  %p2045_p3 = scmp.lt.s32.totalorder %s2581_s9, %s2043_s2 }
  0xd9   : > { %1712 = vmatprep.subr.bf16.mxu1 %v1711_v13  ;;  %v1727_v32 = vpack.c.bf16 %v806_v29, %v805_v28  ;;  %v520_v33 = vld [vmem:[%s449_s12] sm:$0xff]  ;;  %v521_v34 = vld [vmem:[%s449_s12 + $0x8] sm:$0xff]  ;;  %vm1741_vm2 = vmpackc.low %vm533_vm0, %vm533_vm0  ;;  %s2728_s12 = sld [smem:[#allocation29_spill]] }
  0xda   : > { %1706 = vmatpush3.bf16.msra.mxu0 %v1703_v6  ;;  %v1545_v50 = vld [vmem:[%s2680_s5] ss:$0 sm:$0xff] }
  0xdb   : > { %1716 = vmatprep.subr.bf16.mxu0 %v1715_v19  ;;  %v1548_v51 = vld [vmem:[%s2727_s30] ss:$0 sm:$0xff] }
  0xdc   : > { %1714 = vmatpush3.bf16.msra.mxu1 %v1711_v13 }
  0xdd   : > { %1625 = vmatmul.mubr.msk.f32.vlgmr.msra.gmra.mrb[0].mxu0 %vm533_vm0, %v519_v10  ;;  %1724 = vmatprep.subr.bf16.mxu1 %v1723_v16 }
  0xde   : > { %1718 = vmatpush3.bf16.msra.mxu0 %v1715_v19 }
  0xdf   : > { %1720 = vmatprep.subr.bf16.mxu0 %v1719_v22  ;;  %s2589_s23 = scalar_lea.hbm %s2728_s12, %s1572_s26 }
  0xe2   : > { %1722 = vmatpush3.bf16.msra.mxu0 %v1719_v22 }
  0xe3   : > { %1732 = vmatprep.subr.bf16.mxu0 %v1715_v19 }
 0x1b0   : > { %v1626_v24 = vpop.f32.mrb[0].mxu0 }
 0x1b1   : > { %v612_v25 = vadd.f32 %v1626_v24, %v1542_v23  ;;  %v606_v26 = vpop.f32.mrb[1].mxu0 }
 0x1b2   : > { %v607_v27 = vadd.f32 %v1542_v23, %v606_v26 }
 0x1b3   : > { %v616_v31 = vmax.f32 %v612_v25, 0.0 }
 0x1b4   : > { %v615_v30 = vmax.f32 %v607_v27, 0.0 }
 0x1b6   : > { %720 = vrot.lane.b32.xlu0 %v615_v30, %s2162_s13  ;;  %1635 = vmatprep.mubr.msk.f32.mxu1 %vm533_vm0, %v615_v30 }
 0x1b7   : > { %1636 = vmatmul.mubr.msk.f32.vlgmr.msra.gmra.mrb[0].mxu1 %vm533_vm0, %v616_v31 }
 0x1b8   : > { %1726 = vmatpush3.bf16.msra.mxu1 %v1723_v16  ;;  %1657 = vmatprep.mubr.msk.f32.mxu1 %vm533_vm0, %v520_v33 }
 0x1b9   : > { %1728 = vmatprep.subr.bf16.mxu1 %v1727_v32 }
 0x1ba   : > { %722 = vrot.lane.b32.xlu0 %v616_v31, %s2162_s13  ;;  %s2038_s13 = scalar_lea.vmem %s2581_s9, 256 }
 0x1bb   : > { %p2039_p0 = scmp.ne.s32.totalorder %s2581_s9, %s2038_s13  ;;  %p2046_p5 = scmp.lt.s32.totalorder %s2044_s4, %s2038_s13 }
 0x1bc   : > { %1730 = vmatpush3.bf16.msra.mxu1 %v1727_v32 }
 0x1bd   : > { %1739 = vmatprep.subr.bf16.mxu1 %v2163_v46  ;;  %p2040_p4 = pnand %p2039_p0, %p2401_p10  ;;  %p2047_p9 = por %p2046_p5, %p2045_p3 }
 0x1bf   : > { %1658 = vmatmul.mubr.msk.f32.vlgmr.msra.gmra.mrb[2].mxu1 %vm533_vm0, %v521_v34  ;;  %p2041_p6 = pneg %p2040_p4 }
 0x1c0   : > { %1675 = vmatprep.mubr.msk.f32.mxu1 %vm2164_vm1, %v2165_v47 }
 0x1c1   : > { %p2048_p8 = pnand %p2047_p9, %p2041_p6 }
 0x228   : > { %v721_v35 = vpop.permute.xlu0 %720 }
 0x229   : > { %1646 = vmatprep.mubr.msk.f32.mxu0 %vm533_vm0, %v721_v35 }
 0x22c   : > { %v723_v36 = vpop.permute.xlu0 %722 }
 0x22d   : > { %1647 = vmatmul.mubr.msk.f32.vlgmr.msra.gmra.mrb[2].mxu0 %vm533_vm0, %v723_v36 }
 0x22e   : > { %1734 = vmatpush3.bf16.msra.mxu0 %v1715_v19 }
 0x22f   : > { %1736 = vmatprep.subr.bf16.mxu0 %v1719_v22 }
 0x232   : > { %1738 = vmatpush3.bf16.msra.mxu0 %v1719_v22 }
 0x233   : > { %1743 = vmatprep.subr.bf16.mxu0 %v2163_v46 }
 0x28a   : > { %v1637_v37 = vpop.f32.mrb[0].mxu1 }
 0x28b   : > { %v700_v38 = vpop.f32.mrb[1].mxu1  ;;  %v2559_v53 = vadd.f32 %v1637_v37, %v1545_v50 }
 0x28c   : > { %v701_v57 = vadd.f32 %v1545_v50, %v700_v38 }
 0x292   : > { %v1659_v40 = vpop.f32.mrb[2].mxu1 }
 0x293   : > { %v892_v41 = vadd.f32 %v1659_v40, %v1551_v39  ;;  %v886_v42 = vpop.f32.mrb[3].mxu1 }
 0x294   : > { %v887_v43 = vadd.f32 %v1551_v39, %v886_v42 }
 0x295   : > { %v896_v45 = vmax.f32 %v892_v41, 0.0 }
 0x296   : > { %v895_v44 = vmax.f32 %v887_v43, 0.0 }
 0x298   : > { %1668 = vmatprep.mubr.msk.f32.mxu0 %vm533_vm0, %v895_v44 }
 0x299   : > { %1669 = vmatmul.mubr.msk.f32.vlgmr.msra.gmra.mrb[4].mxu0 %vm533_vm0, %v896_v45 }
 0x29a   : > { %1682 = vmatprep.mubr.msk.f32.mxu0 %vm2164_vm1, %v2165_v47 }
 0x300   : > { %v1648_v48 = vpop.f32.mrb[2].mxu0 }
 0x301   : > { %v794_v49 = vpop.f32.mrb[3].mxu0  ;;  %v800_v54 = vadd.f32 %v1648_v48, %v1548_v51 }
 0x302   : > { %v795_v58 = vadd.f32 %v1548_v51, %v794_v49 }
 0x36c   : > { %v1670_v52 = vpop.f32.mrb[4].mxu0 }
 0x36d   : > { %v2561_v55 = vadd.f32 %v1670_v52, %v1548_v51  ;;  %v969_v56 = vpop.f32.mrb[5].mxu0 }
 0x36e   : > { %v970_v59 = vadd.f32 %v1548_v51, %v969_v56 }
 0x36f   : > { %v1744_v60 = vpack.c.bf16 %v800_v54, %v2561_v55  ;;  %v1751_v61 = vpack.c.bf16 %v2559_v53, %v2561_v55 }
 0x370   : > { %v1740_v62 = vpack.c.bf16 %v795_v58, %v970_v59  ;;  %v1748_v63 = vpack.c.bf16 %v701_v57, %v970_v59 }
 0x371   : > { %1746 = vmatpush3.bf16.xpose.msk.msra.mxu0 %vm1741_vm2, %v1744_v60 }
 0x372   : > { %1742 = vmatpush3.bf16.xpose.msk.msra.mxu1 %vm1741_vm2, %v1740_v62 }
 0x373   : > { %1747 = vmatprep.subr.bf16.mxu1 %v2163_v46 }
 0x378   : > { %1683 = vmatmul.mubr.msk.f32.vlgmr.msra.gmra.mrb[6].mxu0 %vm533_vm0, %v2559_v53 }
 0x379   : > { %1676 = vmatmul.mubr.msk.f32.vlgmr.msra.gmra.mrb[4].mxu1 %vm533_vm0, %v701_v57 }
 0x37a   : > { %1749 = vmatpush3.bf16.msra.mxu1 %v1748_v63  ;;  %1689 = vmatprep.mubr.msk.f32.mxu1 %vm2164_vm1, %v2165_v47 }
 0x37b   : > { %1750 = vmatprep.subr.bf16.mxu1 %v2163_v46 }
 0x44b   : > { %v1135_v0 = vpop.f32.mrb[6].mxu0 }
 0x44c   : > { %v1140_v1 = vmul.f32 0.17677669, %v1135_v0  ;;  %v1056_v2 = vpop.f32.mrb[4].mxu1  ;;  %v1684_v3 = vpop.f32.mrb[7].mxu0 }
 0x44d   : > { %v1139_v4 = vmul.f32 0.17677669, %v1056_v2  ;;  %v1677_v5 = vpop.f32.mrb[5].mxu1 }
 0x44e   : > { %1142 = vst [vmem:[%s2574_s0 + $0x8] sm:$0xff] %v1140_v1  ;;  %v1149_v6 = vrot.slane %v1140_v1, 4 }
 0x44f   : > { %1141 = vst [vmem:[%s2574_s0] sm:$0xff] %v1139_v4  ;;  %v1143_v7 = vrot.slane %v1139_v4, 4 }
 0x450   : > { %v1150_v8 = vmax.f32 %v1140_v1, %v1149_v6 }
 0x451   : > { %v1144_v9 = vmax.f32 %v1139_v4, %v1143_v7 }
 0x452   : > { %v1151_v10 = vrot.slane %v1150_v8, 2 }
 0x453   : > { %v1145_v11 = vrot.slane %v1144_v9, 2 }
 0x454   : > { %v1152_v12 = vmax.f32 %v1150_v8, %v1151_v10 }
 0x455   : > { %v1146_v13 = vmax.f32 %v1144_v9, %v1145_v11 }
 0x456   : > { %v1153_v14 = vrot.slane %v1152_v12, 1 }
 0x457   : > { %v1147_v15 = vrot.slane %v1146_v13, 1 }
 0x458   : > { %v1154_v16 = vmax.f32 %v1152_v12, %v1153_v14 }
 0x459   : > { %v1148_v17 = vmax.f32 %v1146_v13, %v1147_v15 }
 0x45a   : > { %v1156_v18 = vsub.f32 %v1140_v1, %v1154_v16 }
 0x45b   : > { %v1155_v19 = vsub.f32 %v1139_v4, %v1148_v17 }
 0x45c   : > { %v1159_v20 = vmul.f32 1.442695, %v1156_v18 }
 0x45d   : > { %v1157_v21 = vmul.f32 1.442695, %v1155_v19 }
 0x45e   : > { %1858 = vpow2.f32 %v1159_v20 }
 0x45f   : > { %1860 = vpow2.f32 %v1157_v21 }
 0x468   : > { %v1859_v22 = vpop.eup %1858 }
 0x469   : > { %v1861_v23 = vpop.eup %1860  ;;  %v1167_v24 = vrot.slane %v1859_v22, 4 }
 0x46a   : > { %v1161_v25 = vrot.slane %v1861_v23, 4 }
 0x46b   : > { %v1168_v26 = vadd.f32 %v1859_v22, %v1167_v24 }
 0x46c   : > { %v1162_v27 = vadd.f32 %v1861_v23, %v1161_v25 }
 0x46d   : > { %v1169_v28 = vrot.slane %v1168_v26, 2 }
 0x46e   : > { %v1163_v29 = vrot.slane %v1162_v27, 2 }
 0x46f   : > { %v1170_v30 = vadd.f32 %v1169_v28, %v1168_v26 }
 0x470   : > { %v1164_v31 = vadd.f32 %v1163_v29, %v1162_v27 }
 0x471   : > { %v1171_v32 = vrot.slane %v1170_v30, 1 }
 0x472   : > { %v1165_v33 = vrot.slane %v1164_v31, 1 }
 0x473   : > { %v1172_v35 = vadd.f32 %v1171_v32, %v1170_v30 }
 0x474   : > { %v1166_v34 = vadd.f32 %v1165_v33, %v1164_v31 }
 0x476   : > { %1862 = vrcp.f32 %v1166_v34 }
 0x477   : > { %1864 = vrcp.f32 %v1172_v35 }
 0x480   : > { %v1863_v36 = vpop.eup %1862 }
 0x481   : > { %v1175_v37 = vmul.f32 %v1863_v36, %v1861_v23  ;;  %v1865_v38 = vpop.eup %1864 }
 0x482   : > { %v1176_v39 = vmul.f32 %v1865_v38, %v1859_v22 }
 0x483   : > { %1690 = vmatmul.mubr.f32.vlgmr.msra.gmra.mrb[6].mxu1 %v1175_v37 }
 0x484   : > { %1752 = vmatpush3.bf16.msra.mxu1 %v1751_v61  ;;  %1696 = vmatprep.mubr.msk.f32.mxu1 %vm2164_vm1, %v2165_v47 }
 0x487   : > { %1697 = vmatmul.mubr.f32.vlgmr.msra.gmra.mrb[8].mxu1 %v1176_v39 }
 0x488   : > { %2051 = shalt.err (!%p2048_p8)
}
 0x489   : > { %s2052_s29 = scalar_lea.hbm %s2589_s23, 256  ;;  %s2056_s30 = scalar_lea.hbm %s2728_s12, 512 }
 0x48a   : > { %p2053_p11 = scmp.ne.s32.totalorder %s2589_s23, %s2052_s29  ;;  %p2057_p1 = scmp.lt.u32.totalorder %s2589_s23, %s2728_s12 }
 0x48b   : > { %p2058_p2 = scmp.lt.u32.totalorder %s2056_s30, %s2052_s29  ;;  %p2060_p0 = scmp.lt.u32.totalorder %s2052_s29, %s2589_s23 }
 0x48c   : > { %p2054_p7 = pnand %p2053_p11, %p2401_p10 }
 0x48d   : > { %p2059_p13 = por %p2058_p2, %p2057_p1 }
 0x48e   : > { %p2055_p12 = pneg %p2054_p7 }
 0x48f   : > { %p2061_p4 = por %p2060_p0, %p2059_p13 }
 0x491   : > { %p2062_p6 = pnand %p2061_p4, %p2055_p12 }
 0x493   : > { %2065 = shalt.err (!%p2062_p6)
}
 0x494   : > { %s2167_s15 = smov 128   ;;  %s2168_s13 = smov 8  }
 0x495   : > { %1773 = dma.vmem_to_hbm [thread:$0]  (%p2401_p10), %s2581_s9, 256, %s2589_s23, %s1320_s14, %s2167_s15, %s2167_s15, %s2168_s13  }
 0x496   : > { %s513_s10 = scalar_lea.vmem [#allocation14], %s2499_s11  ;;  %s2729_s16 = sld [smem:[#allocation30_spill]] }
 0x497   : > { %s1354_s2 = sshll.u32 %s513_s10, 4  ;;  %s1325_s11 = scalar_lea.sflag [#allocation15], %s2496_s28  ;;  %s2620_s2 = int_to_ptr.vmem [resolvable:$true] %s1354_s2 }
 0x498   : > { %s2066_s9 = scalar_lea.vmem %s2620_s2, 256  ;;  %s2169_s23 = smov [#allocation14]  }
 0x499   : > { %p2067_p3 = scmp.ne.s32.totalorder %s2620_s2, %s2066_s9  ;;  %s2070_s21 = sshll.u32 %s2169_s23, 4  ;;  %s2071_s21 = int_to_ptr.vmem [resolvable:$false] %s2070_s21 }
 0x49a   : > { %s2072_s14 = scalar_lea.vmem %s2071_s21, 512  ;;  %p2073_p8 = scmp.lt.s32.totalorder %s2620_s2, %s2071_s21 }
 0x49b   : > { %p2068_p5 = pnand %p2067_p3, %p2401_p10  ;;  %p2074_p11 = scmp.lt.s32.totalorder %s2072_s14, %s2066_s9 }
 0x49c   : > { %s2627_s27 = scalar_lea.hbm %s2729_s16, %s1572_s26 }
 0x49d   : > { %p2069_p9 = pneg %p2068_p5  ;;  %p2075_p7 = por %p2074_p11, %p2073_p8 }
 0x49f   : > { %p2076_p12 = pnand %p2075_p7, %p2069_p9 }
 0x556   : > { %v1243_v40 = vpop.f32.mrb[6].mxu1 }
 0x557   : > { %1317 = vst.msk [vmem:[%s513_s10] sm:$0xff] %vm533_vm0, %v1243_v40  ;;  %v1691_v41 = vpop.f32.mrb[7].mxu1 }
 0x55a   : > { %v1313_v42 = vpop.f32.mrb[8].mxu1 }
 0x55b   : > { %1318 = vst.msk [vmem:[%s513_s10 + $0x8] sm:$0xff] %vm533_vm0, %v1313_v42  ;;  %v1698_v43 = vpop.f32.mrb[9].mxu1 }
 0x55c   : > { %2079 = shalt.err (!%p2076_p12)
}
 0x55d   : > { %s2080_s26 = scalar_lea.hbm %s2627_s27, 256  ;;  %s2084_s25 = scalar_lea.hbm %s2729_s16, 512 }
 0x55e   : > { %p2081_p1 = scmp.ne.s32.totalorder %s2627_s27, %s2080_s26  ;;  %p2085_p0 = scmp.lt.u32.totalorder %s2627_s27, %s2729_s16 }
 0x55f   : > { %p2086_p4 = scmp.lt.u32.totalorder %s2084_s25, %s2080_s26  ;;  %p2088_p3 = scmp.lt.u32.totalorder %s2080_s26, %s2627_s27 }
 0x560   : > { %p2082_p2 = pnand %p2081_p1, %p2401_p10 }
 0x561   : > { %p2087_p6 = por %p2086_p4, %p2085_p0 }
 0x562   : > { %p2083_p13 = pneg %p2082_p2 }
 0x563   : > { %p2089_p5 = por %p2088_p3, %p2087_p6 }
 0x565   : > { %p2090_p9 = pnand %p2089_p5, %p2083_p13 }
 0x567   : > { %2093 = shalt.err (!%p2090_p9)
}
 0x568   : > { %1774 = dma.vmem_to_hbm [thread:$0]  (%p2401_p10), %s2620_s2, 256, %s2627_s27, %s1325_s11, %s2167_s15, %s2167_s15, %s2168_s13  }
 0x569 PF: > { %s2730_s29 = sld [smem:[#allocation23_spill]]  ;;  %s2731_s9 = sld [smem:[#allocation24_spill]] }
 0x56a   : > { %p2733_p11 = scmp.ge.s32.totalorder %s2152_s20, 2 }
 0x56f   : > { %s1369_s23 = sand.u32 1, %s2730_s29   ;;  %p2732_p8 = scmp.ne.s32.totalorder %s2731_s9, 0 }
 0x570   : > { %s1370_s21 = scalar_lea.sflag [#allocation4], %s1369_s23 }
 0x571   : > { %p1798_p7 = pnand %p2733_p11, %p2732_p8 }
 0x573   : > { %2131 = dma.done.wait (!%p1798_p7), %s1370_s21, 256  }
 0x574   : > { %2133 = vsyncadd (!%p1798_p7), %s1370_s21, 4294967040  ;;  %s1379_s17 = scalar_lea.sflag [#allocation15], %s1369_s23 }
 0x575   : > { %2135 = dma.done.wait (!%p1798_p7), %s1379_s17, 256  }
 0x576   : > { %2137 = vsyncadd (!%p1798_p7), %s1379_s17, 4294967040  ;;  %p33_p10 = scmp.ge.s32.totalorder %s2391_s24, 4   ;;  %s2734_s17 = smov %s2144_s18 }
 0x577   : > { %s2735_s18 = smov %s2148_s19  ;;  %s2736_s19 = smov %s2407_s22 }
 0x578   : > { %s2737_s20 = smov %s2391_s24  ;;  %35 = sbr.rel (!%p33_p10) target bundleno = 18 (0x12), region = 151 }
 0x57f   :  { %1384 = vsyncpa [#allocation3], 1 }
 0x580   :  { %1386 = vsyncpa [#allocation3 + $0x1], 1 }
 0x581   :  { %1387 = vsyncpa [#allocation6], 1 }
 0x582   :  { %1389 = vsyncpa [#allocation6 + $0x1], 1 }
 0x583   :  { %1390 = vsyncpa [#allocation9], 1 }
 0x584   :  { %1391 = vsyncpa [#allocation12], 1 }
 0x585   :  { %1392 = vsyncpa [#allocation4], 1 }
 0x586   :  { %1394 = vsyncpa [#allocation4 + $0x1], 1 }
 0x587   :  { %1395 = vsyncpa [#allocation15], 1 }
 0x588   :  { %1397 = vsyncpa [#allocation15 + $0x1], 1 }

</bundles_post_ra>
